<compile_context>
chip_gen: v6e
topology: v6e:2x2x1
jax: 0.10.0
libtpu: 0.0.40
codegen_flags: <defaults>
</compile_context>

<pallas_src>
import functools
import math

import jax
import jax.numpy as jnp
import numpy as np
from jax.experimental import pallas as pl
from jax.experimental.pallas import tpu as pltpu

M_MARGIN = 4  # module default m = 4


def _chebyshev(m, c):
    """T_m(c) -- matches the module's self.mlambda table (m in 0..5)."""
    if m == 0:
        return jnp.ones_like(c)
    if m == 1:
        return c
    if m == 2:
        return 2.0 * c * c - 1.0
    if m == 3:
        return (4.0 * c * c - 3.0) * c
    if m == 4:
        c2 = c * c
        return 8.0 * c2 * c2 - 8.0 * c2 + 1.0
    if m == 5:
        c2 = c * c
        return ((16.0 * c2 - 20.0) * c2 + 5.0) * c
    raise ValueError(f"unsupported m={m}")


def _sphere_linear_kernel(x_ref, w_ref, invw_ref, cos_ref, phi_ref,
                          acc_ref, xsq_ref, *, m):
    kk = pl.program_id(2)

    @pl.when(kk == 0)
    def _():
        acc_ref[...] = jnp.zeros_like(acc_ref)
        xsq_ref[...] = jnp.zeros_like(xsq_ref)

    x = x_ref[...]
    xf = x.astype(jnp.float32)

    # MXU: partial (tn, to) product, f32 accumulation.
    acc_ref[...] += jnp.dot(x, w_ref[...], preferred_element_type=jnp.float32)
    # Row ||x||^2 partial sums (tiny next to the matmul).
    xsq_ref[...] += jnp.sum(xf * xf, axis=1, keepdims=True)

    @pl.when(kk == pl.num_programs(2) - 1)
    def _():
        xsq = xsq_ref[...]
        inv_xlen = jax.lax.rsqrt(jnp.maximum(xsq, 1e-16))   # EUP
        xlen = xsq * inv_xlen                                # = sqrt(xsq)

        # renorm(2,1,1e-5).mul(1e5) followed by /(xlen*wlen) collapses to a
        # single per-column 1/||w_col|| factor (zero-norm columns only differ
        # inside the reference's 1e-8 clamp; padded columns give cos = 0).
        cos_t = acc_ref[...] * invw_ref[...] * inv_xlen
        cos_t = jnp.clip(cos_t, -1.0, 1.0)

        # k = floor(acos(cos)/(3.14/m)) via monotone thresholds
        # (theta >= j*(3.14/m)  <=>  cos <= cos(j*3.14/m)); parity (-1)^k is
        # accumulated in the same unrolled loop -- no mod / divide.
        k_f = jnp.zeros_like(cos_t)
        sign = jnp.ones_like(cos_t)
        for j in range(1, m + 1):
            ind = (cos_t <= math.cos(j * 3.14 / m)).astype(jnp.float32)
            k_f = k_f + ind
            sign = sign * (1.0 - 2.0 * ind)

        cos_m = _chebyshev(m, cos_t)
        phi_t = sign * cos_m - 2.0 * k_f

        cos_ref[...] = (cos_t * xlen).astype(cos_ref.dtype)
        phi_ref[...] = (phi_t * xlen).astype(phi_ref.dtype)


def _round_up(a, b):
    return ((a + b - 1) // b) * b


def sphere_linear(x, w, *, m=4, tile_n=256, tile_out=512, tile_k=512):
    """x: (N, in_features), w: (in_features, out_features) -> (cos, phi)."""
    n, kin = x.shape
    kin2, out_f = w.shape
    assert kin == kin2

    # Clamp tiles to the (padded) problem; rows multiple of 8, lane dims
    # multiples of 128 (lane-dense stores / MXU-aligned, per v5e/v6e/v7x).
    tn = min(_round_up(tile_n, 8), _round_up(n, 8))
    to = min(_round_up(tile_out, 128), _round_up(out_f, 128))
    tk = min(_round_up(tile_k, 128), _round_up(kin, 128))
    n_p = _round_up(n, tn)
    out_p = _round_up(out_f, to)
    k_p = _round_up(kin, tk)

    x_pad = jnp.pad(x, ((0, n_p - n), (0, k_p - kin)))
    w_pad = jnp.pad(w, ((0, k_p - kin), (0, out_p - out_f)))

    # Hoisted per-column inverse weight norm (tiny (1, out) op): keeps the
    # kernel's K-loop MXU-clean instead of re-reducing W per row tile.
    col_sq = jnp.sum(w_pad.astype(jnp.float32) ** 2, axis=0, keepdims=True)
    inv_wnorm = jax.lax.rsqrt(jnp.maximum(col_sq, 1e-24))

    grid = (n_p // tn, out_p // to, k_p // tk)
    out_shape = (
        jax.ShapeDtypeStruct((n_p, out_p), jnp.float32),
        jax.ShapeDtypeStruct((n_p, out_p), jnp.float32),
    )

    cos_pad, phi_pad = pl.pallas_call(
        functools.partial(_sphere_linear_kernel, m=m),
        out_shape=out_shape,
        grid_spec=pltpu.PrefetchScalarGridSpec(
            num_scalar_prefetch=0,
            grid=grid,
            in_specs=[
                pl.BlockSpec((tn, tk), lambda i, j, kk: (i, kk)),   # x tile
                pl.BlockSpec((tk, to), lambda i, j, kk: (kk, j)),   # w tile
                pl.BlockSpec((1, to), lambda i, j, kk: (0, j)),     # 1/||w_col||
            ],
            out_specs=[
                pl.BlockSpec((tn, to), lambda i, j, kk: (i, j)),
                pl.BlockSpec((tn, to), lambda i, j, kk: (i, j)),
            ],
            scratch_shapes=[
                pltpu.VMEM((tn, to), jnp.float32),   # matmul accumulator
                pltpu.VMEM((tn, 1), jnp.float32),    # ||x||^2 accumulator
            ],
        ),
        compiler_params=pltpu.CompilerParams(
            dimension_semantics=("parallel", "parallel", "arbitrary"),
            vmem_limit_bytes=32 * 1024 * 1024,
        ),
    )(x_pad, w_pad, inv_wnorm)

    return cos_pad[:n, :out_f], phi_pad[:n, :out_f]


def _reference(x, w, m=4):
    """Pure-JAX faithful translation of the PyTorch forward (for checking)."""
    x = x.astype(jnp.float32)
    w = w.astype(jnp.float32)
    col_norm = jnp.sqrt(jnp.sum(w * w, axis=0, keepdims=True))
    scale = jnp.where(col_norm > 1e-5,
                      1e-5 / jnp.maximum(col_norm, 1e-30), 1.0) * 1e5
    ww = w * scale
    xlen = jnp.sqrt(jnp.sum(x * x, axis=1, keepdims=True))
    wlen = jnp.sqrt(jnp.sum(ww * ww, axis=0, keepdims=True))
    cos_theta = jnp.dot(x, ww, precision=jax.lax.Precision.HIGHEST)
    cos_theta = jnp.clip(cos_theta / jnp.maximum(xlen * wlen, 1e-8), -1.0, 1.0)
    theta = jnp.arccos(cos_theta)
    kk = jnp.floor(theta / (3.14 / m))
    cos_m = _chebyshev(m, cos_theta)
    phi = (1.0 - 2.0 * jnp.mod(kk, 2.0)) * cos_m - 2.0 * kk
    return cos_theta * xlen, phi * xlen


if __name__ == "__main__":
    # Small, deliberately non-tile-aligned shapes (exercise padding + the
    # (2, 3, 2) grid / reduction pipeline with small tiles).
    N, IN_F, OUT_F = 24, 192, 320
    key = jax.random.PRNGKey(0)
    kx, kw = jax.random.split(key)
    x = jax.random.normal(kx, (N, IN_F), dtype=jnp.float32)
    # Parameter init as in __init__: uniform(-1, 1); the in-place renorm in
    # __init__ is re-applied by forward anyway, so the raw weight is passed.
    w = jax.random.uniform(kw, (IN_F, OUT_F), dtype=jnp.float32,
                           minval=-1.0, maxval=1.0)

    cos_out, phi_out = jax.block_until_ready(
        sphere_linear(x, w, tile_n=16, tile_out=128, tile_k=128))

    cos_ref, phi_ref = _reference(x, w)
    cos_np, phi_np = np.asarray(cos_out), np.asarray(phi_out)
    cos_rf, phi_rf = np.asarray(cos_ref), np.asarray(phi_ref)

    np.testing.assert_allclose(cos_np, cos_rf, rtol=2e-3, atol=2e-3)

    # phi has a genuine +/-2 jump exactly at theta = j*3.14/m; fp rounding
    # between the kernel's threshold test and the reference's acos/floor can
    # flip k there, so mask elements whose cos sits within 1e-4 of a boundary.
    xlen_np = np.sqrt((np.asarray(x, dtype=np.float64) ** 2).sum(1, keepdims=True))
    cos_norm = cos_rf / np.maximum(xlen_np, 1e-8)
    thr = np.cos(np.arange(1, M_MARGIN + 1) * (3.14 / M_MARGIN))
    near_edge = np.any(np.abs(cos_norm[..., None] - thr[None, None, :]) < 1e-4,
                       axis=-1)
    np.testing.assert_allclose(phi_np[~near_edge], phi_rf[~near_edge],
                               rtol=2e-3, atol=2e-3)

    print("KERNEL_OK")
</pallas_src>

<mosaic_0001>
module attributes {stable_mosaic.version = 11 : i64} {
  func.func @_sphere_linear_kernel(%arg0: i32, %arg1: i32, %arg2: i32, %arg3: memref<16x128xf32, #tpu.memory_space<vmem>>, %arg4: memref<128x128xf32, #tpu.memory_space<vmem>>, %arg5: memref<1x128xf32, #tpu.memory_space<vmem>>, %arg6: memref<16x128xf32, #tpu.memory_space<vmem>>, %arg7: memref<16x128xf32, #tpu.memory_space<vmem>>, %arg8: memref<16x128xf32, #tpu.memory_space<vmem>>, %arg9: memref<16x1xf32, #tpu.memory_space<vmem>>) attributes {dimension_semantics = [#tpu.dimension_semantics<parallel>, #tpu.dimension_semantics<parallel>, #tpu.dimension_semantics<arbitrary>], iteration_bounds = array<i64: 2, 3, 2>, scalar_prefetch = 0 : i64, scratch_operands = 2 : i64, tpu.core_type = #tpu.core_type<tc>, window_params = [{transform_indices = @transform_0, window_bounds = array<i64: 16, 128>}, {transform_indices = @transform_1, window_bounds = array<i64: 128, 128>}, {transform_indices = @transform_2, window_bounds = array<i64: 1, 128>}, {transform_indices = @transform_3, window_bounds = array<i64: 16, 128>}, {transform_indices = @transform_4, window_bounds = array<i64: 16, 128>}]} {
    %c0_i32 = arith.constant 0 : i32
    %0 = arith.cmpi eq, %arg2, %c0_i32 : i32
    %1 = arith.extui %0 : i1 to i32
    %c0_i32_0 = arith.constant 0 : i32
    %2 = arith.cmpi ne, %1, %c0_i32_0 : i32
    scf.if %2 {
      %cst_14 = arith.constant 0.000000e+00 : f32
      %18 = vector.broadcast %cst_14 : f32 to vector<16x128xf32>
      %c0_15 = arith.constant 0 : index
      %c0_16 = arith.constant 0 : index
      %19 = vector.load %arg8[%c0_15, %c0_16] : memref<16x128xf32, #tpu.memory_space<vmem>>, vector<16x128xf32>
      tpu.vector_store %arg8[%c0_15, %c0_16], %18 {strides = array<i32>} : memref<16x128xf32, #tpu.memory_space<vmem>>, vector<16x128xf32>,
      %cst_17 = arith.constant 0.000000e+00 : f32
      %20 = vector.broadcast %cst_17 : f32 to vector<16x1xf32>
      %c0_18 = arith.constant 0 : index
      %c0_19 = arith.constant 0 : index
      %21 = vector.load %arg9[%c0_18, %c0_19] : memref<16x1xf32, #tpu.memory_space<vmem>>, vector<16x1xf32>
      tpu.vector_store %arg9[%c0_18, %c0_19], %20 {strides = array<i32>} : memref<16x1xf32, #tpu.memory_space<vmem>>, vector<16x1xf32>,
    } else {
    }
    %c0 = arith.constant 0 : index
    %c0_1 = arith.constant 0 : index
    %3 = vector.load %arg3[%c0, %c0_1] : memref<16x128xf32, #tpu.memory_space<vmem>>, vector<16x128xf32>
    %c0_2 = arith.constant 0 : index
    %c0_3 = arith.constant 0 : index
    %4 = vector.load %arg8[%c0_2, %c0_3] : memref<16x128xf32, #tpu.memory_space<vmem>>, vector<16x128xf32>
    %c0_4 = arith.constant 0 : index
    %c0_5 = arith.constant 0 : index
    %5 = vector.load %arg4[%c0_4, %c0_5] : memref<128x128xf32, #tpu.memory_space<vmem>>, vector<128x128xf32>
    %cst = arith.constant dense<0.000000e+00> : vector<16x128xf32>
    %6 = tpu.matmul %3, %5, %cst {dimension_numbers = #tpu.dot_dimension_numbers<[1], [0], [0], [1], [0, 0, 1, 1], [], []>} : vector<16x128xf32>, vector<128x128xf32>, vector<16x128xf32> -> vector<16x128xf32>
    %7 = arith.addf %4, %6 : vector<16x128xf32>
    %c0_6 = arith.constant 0 : index
    %c0_7 = arith.constant 0 : index
    %8 = vector.load %arg8[%c0_6, %c0_7] : memref<16x128xf32, #tpu.memory_space<vmem>>, vector<16x128xf32>
    tpu.vector_store %arg8[%c0_6, %c0_7], %7 {strides = array<i32>} : memref<16x128xf32, #tpu.memory_space<vmem>>, vector<16x128xf32>,
    %c0_8 = arith.constant 0 : index
    %c0_9 = arith.constant 0 : index
    %9 = vector.load %arg9[%c0_8, %c0_9] : memref<16x1xf32, #tpu.memory_space<vmem>>, vector<16x1xf32>
    %10 = arith.mulf %3, %3 : vector<16x128xf32>
    %cst_10 = arith.constant dense<0.000000e+00> : vector<16xf32>
    %11 = vector.multi_reduction <add>, %10, %cst_10 [1] : vector<16x128xf32> to vector<16xf32>
    %12 = vector.shape_cast %11 : vector<16xf32> to vector<16x1xf32>
    %13 = arith.addf %9, %12 : vector<16x1xf32>
    %c0_11 = arith.constant 0 : index
    %c0_12 = arith.constant 0 : index
    %14 = vector.load %arg9[%c0_11, %c0_12] : memref<16x1xf32, #tpu.memory_space<vmem>>, vector<16x1xf32>
    tpu.vector_store %arg9[%c0_11, %c0_12], %13 {strides = array<i32>} : memref<16x1xf32, #tpu.memory_space<vmem>>, vector<16x1xf32>,
    %c1_i32 = arith.constant 1 : i32
    %15 = arith.cmpi eq, %arg2, %c1_i32 : i32
    %16 = arith.extui %15 : i1 to i32
    %c0_i32_13 = arith.constant 0 : i32
    %17 = arith.cmpi ne, %16, %c0_i32_13 : i32
    scf.if %17 {
      %c0_14 = arith.constant 0 : index
      %c0_15 = arith.constant 0 : index
      %18 = vector.load %arg9[%c0_14, %c0_15] : memref<16x1xf32, #tpu.memory_space<vmem>>, vector<16x1xf32>
      %cst_16 = arith.constant 1.000000e-16 : f32
      %19 = vector.broadcast %cst_16 : f32 to vector<16x1xf32>
      %20 = arith.maximumf %18, %19 : vector<16x1xf32>
      %21 = math.rsqrt %20 : vector<16x1xf32>
      %22 = arith.mulf %18, %21 : vector<16x1xf32>
      %c0_17 = arith.constant 0 : index
      %c0_18 = arith.constant 0 : index
      %23 = vector.load %arg8[%c0_17, %c0_18] : memref<16x128xf32, #tpu.memory_space<vmem>>, vector<16x128xf32>
      %c0_19 = arith.constant 0 : index
      %c0_20 = arith.constant 0 : index
      %24 = vector.load %arg5[%c0_19, %c0_20] : memref<1x128xf32, #tpu.memory_space<vmem>>, vector<1x128xf32>
      %25 = vector.broadcast %24 : vector<1x128xf32> to vector<16x128xf32>
      %26 = arith.mulf %23, %25 : vector<16x128xf32>
      %27 = vector.broadcast %21 : vector<16x1xf32> to vector<16x128xf32>
      %28 = arith.mulf %26, %27 : vector<16x128xf32>
      %cst_21 = arith.constant -1.000000e+00 : f32
      %cst_22 = arith.constant 1.000000e+00 : f32
      %29 = vector.broadcast %cst_21 : f32 to vector<16x128xf32>
      %30 = arith.maximumf %29, %28 : vector<16x128xf32>
      %31 = vector.broadcast %cst_22 : f32 to vector<16x128xf32>
      %32 = arith.minimumf %31, %30 : vector<16x128xf32>
      %cst_23 = arith.constant 0.000000e+00 : f32
      %33 = vector.broadcast %cst_23 : f32 to vector<16x128xf32>
      %cst_24 = arith.constant 1.000000e+00 : f32
      %34 = vector.broadcast %cst_24 : f32 to vector<16x128xf32>
      %cst_25 = arith.constant 0.707388282 : f32
      %35 = vector.broadcast %cst_25 : f32 to vector<16x128xf32>
      %36 = arith.cmpf ole, %32, %35 : vector<16x128xf32>
      %37 = arith.extui %36 : vector<16x128xi1> to vector<16x128xi32>
      %38 = arith.sitofp %37 : vector<16x128xi32> to vector<16x128xf32>
      %39 = arith.addf %33, %38 : vector<16x128xf32>
      %cst_26 = arith.constant 2.000000e+00 : f32
      %40 = vector.broadcast %cst_26 : f32 to vector<16x128xf32>
      %41 = arith.mulf %40, %38 : vector<16x128xf32>
      %cst_27 = arith.constant 1.000000e+00 : f32
      %42 = vector.broadcast %cst_27 : f32 to vector<16x128xf32>
      %43 = arith.subf %42, %41 : vector<16x128xf32>
      %44 = arith.mulf %34, %43 : vector<16x128xf32>
      %cst_28 = arith.constant 7.96326727E-4 : f32
      %45 = vector.broadcast %cst_28 : f32 to vector<16x128xf32>
      %46 = arith.cmpf ole, %32, %45 : vector<16x128xf32>
      %47 = arith.extui %46 : vector<16x128xi1> to vector<16x128xi32>
      %48 = arith.sitofp %47 : vector<16x128xi32> to vector<16x128xf32>
      %49 = arith.addf %39, %48 : vector<16x128xf32>
      %cst_29 = arith.constant 2.000000e+00 : f32
      %50 = vector.broadcast %cst_29 : f32 to vector<16x128xf32>
      %51 = arith.mulf %50, %48 : vector<16x128xf32>
      %cst_30 = arith.constant 1.000000e+00 : f32
      %52 = vector.broadcast %cst_30 : f32 to vector<16x128xf32>
      %53 = arith.subf %52, %51 : vector<16x128xf32>
      %54 = arith.mulf %44, %53 : vector<16x128xf32>
      %cst_31 = arith.constant -0.706261635 : f32
      %55 = vector.broadcast %cst_31 : f32 to vector<16x128xf32>
      %56 = arith.cmpf ole, %32, %55 : vector<16x128xf32>
      %57 = arith.extui %56 : vector<16x128xi1> to vector<16x128xi32>
      %58 = arith.sitofp %57 : vector<16x128xi32> to vector<16x128xf32>
      %59 = arith.addf %49, %58 : vector<16x128xf32>
      %cst_32 = arith.constant 2.000000e+00 : f32
      %60 = vector.broadcast %cst_32 : f32 to vector<16x128xf32>
      %61 = arith.mulf %60, %58 : vector<16x128xf32>
      %cst_33 = arith.constant 1.000000e+00 : f32
      %62 = vector.broadcast %cst_33 : f32 to vector<16x128xf32>
      %63 = arith.subf %62, %61 : vector<16x128xf32>
      %64 = arith.mulf %54, %63 : vector<16x128xf32>
      %cst_34 = arith.constant -0.999998748 : f32
      %65 = vector.broadcast %cst_34 : f32 to vector<16x128xf32>
      %66 = arith.cmpf ole, %32, %65 : vector<16x128xf32>
      %67 = arith.extui %66 : vector<16x128xi1> to vector<16x128xi32>
      %68 = arith.sitofp %67 : vector<16x128xi32> to vector<16x128xf32>
      %69 = arith.addf %59, %68 : vector<16x128xf32>
      %cst_35 = arith.constant 2.000000e+00 : f32
      %70 = vector.broadcast %cst_35 : f32 to vector<16x128xf32>
      %71 = arith.mulf %70, %68 : vector<16x128xf32>
      %cst_36 = arith.constant 1.000000e+00 : f32
      %72 = vector.broadcast %cst_36 : f32 to vector<16x128xf32>
      %73 = arith.subf %72, %71 : vector<16x128xf32>
      %74 = arith.mulf %64, %73 : vector<16x128xf32>
      %75 = arith.mulf %32, %32 : vector<16x128xf32>
      %cst_37 = arith.constant 8.000000e+00 : f32
      %76 = vector.broadcast %cst_37 : f32 to vector<16x128xf32>
      %77 = arith.mulf %76, %75 : vector<16x128xf32>
      %78 = arith.mulf %77, %75 : vector<16x128xf32>
      %cst_38 = arith.constant 8.000000e+00 : f32
      %79 = vector.broadcast %cst_38 : f32 to vector<16x128xf32>
      %80 = arith.mulf %79, %75 : vector<16x128xf32>
      %81 = arith.subf %78, %80 : vector<16x128xf32>
      %cst_39 = arith.constant 1.000000e+00 : f32
      %82 = vector.broadcast %cst_39 : f32 to vector<16x128xf32>
      %83 = arith.addf %81, %82 : vector<16x128xf32>
      %84 = arith.mulf %74, %83 : vector<16x128xf32>
      %cst_40 = arith.constant 2.000000e+00 : f32
      %85 = vector.broadcast %cst_40 : f32 to vector<16x128xf32>
      %86 = arith.mulf %85, %69 : vector<16x128xf32>
      %87 = arith.subf %84, %86 : vector<16x128xf32>
      %88 = vector.broadcast %22 : vector<16x1xf32> to vector<16x128xf32>
      %89 = arith.mulf %32, %88 : vector<16x128xf32>
      %c0_41 = arith.constant 0 : index
      %c0_42 = arith.constant 0 : index
      %90 = vector.load %arg6[%c0_41, %c0_42] : memref<16x128xf32, #tpu.memory_space<vmem>>, vector<16x128xf32>
      tpu.vector_store %arg6[%c0_41, %c0_42], %89 {strides = array<i32>} : memref<16x128xf32, #tpu.memory_space<vmem>>, vector<16x128xf32>,
      %91 = vector.broadcast %22 : vector<16x1xf32> to vector<16x128xf32>
      %92 = arith.mulf %87, %91 : vector<16x128xf32>
      %c0_43 = arith.constant 0 : index
      %c0_44 = arith.constant 0 : index
      %93 = vector.load %arg7[%c0_43, %c0_44] : memref<16x128xf32, #tpu.memory_space<vmem>>, vector<16x128xf32>
      tpu.vector_store %arg7[%c0_43, %c0_44], %92 {strides = array<i32>} : memref<16x128xf32, #tpu.memory_space<vmem>>, vector<16x128xf32>,
    } else {
    }
    return
  }
  func.func @transform_0(%arg0: i32, %arg1: i32, %arg2: i32) -> (i32, i32) {
    %c0_i32 = arith.constant 0 : i32
    return %arg0, %arg2 : i32, i32
  }
  func.func @transform_1(%arg0: i32, %arg1: i32, %arg2: i32) -> (i32, i32) {
    %c0_i32 = arith.constant 0 : i32
    return %arg2, %arg1 : i32, i32
  }
  func.func @transform_2(%arg0: i32, %arg1: i32, %arg2: i32) -> (i32, i32) {
    %c0_i32 = arith.constant 0 : i32
    %c0_i32_0 = arith.constant 0 : i32
    return %c0_i32, %arg1 : i32, i32
  }
  func.func @transform_3(%arg0: i32, %arg1: i32, %arg2: i32) -> (i32, i32) {
    %c0_i32 = arith.constant 0 : i32
    return %arg0, %arg1 : i32, i32
  }
  func.func @transform_4(%arg0: i32, %arg1: i32, %arg2: i32) -> (i32, i32) {
    %c0_i32 = arith.constant 0 : i32
    return %arg0, %arg1 : i32, i32
  }
}

</mosaic_0001>

<bundles_post_ra>
// kernel: tpu_custom_call.1
= control target key start
LH: loop header
LB: loop body
LE: loop exit
PB: predicated region body
PF: predicated region fallthrough
CT: control target
= control target key end

     0   :  { %s1744_s0 = inlined_call_operand.hbm [shape: f32[32,256], index: 0, kind: input, shape index: {}]   ;;  %s1745_s1 = inlined_call_operand.hbm [shape: f32[256,384], index: 1, kind: input, shape index: {}]   ;;  %s1746_s2 = inlined_call_operand.vmem [shape: f32[1,384], index: 2, kind: input, shape index: {}]   ;;  %s1747_s3 = inlined_call_operand.hbm [shape: f32[32,384], index: 3, kind: output, shape index: {0}]   ;;  %s1748_s4 = inlined_call_operand.hbm [shape: f32[32,384], index: 4, kind: output, shape index: {1}]  }
   0x1   :  { %1764 = sst [smem:[#allocation27_spill]] %s1744_s0 }
   0x2   :  { %1765 = sst [smem:[#allocation28_spill]] %s1745_s1 }
   0x3   :  { %1766 = sst [smem:[#allocation29_spill]] %s1746_s2 }
   0x4   :  { %1767 = sst [smem:[#allocation30_spill]] %s1747_s3 }
   0x5   :  { %1768 = sst [smem:[#allocation31_spill]] %s1748_s4 }
   0x6   :  { %10 = vsyncpa [#allocation5], 0 }
   0x7   :  { %12 = vsyncpa [#allocation5 + $0x1], 0 }
   0x8   :  { %13 = vsyncpa [#allocation8], 0 }
   0x9   :  { %15 = vsyncpa [#allocation8 + $0x1], 0 }
   0xa   :  { %16 = vsyncpa [#allocation6], 0 }
   0xb   :  { %18 = vsyncpa [#allocation6 + $0x1], 0 }
   0xc   :  { %19 = vsyncpa [#allocation11], 0 }
   0xd   :  { %21 = vsyncpa [#allocation11 + $0x1], 0  ;;  %s1321_s15 = smov 0   ;;  %s1323_s16 = smov 0  }
   0xe   :  { %s1325_s17 = smov 0   ;;  %s1327_s18 = smov 0  }
   0xf   :  { %s1329_s19 = smov 0   ;;  %s1331_s20 = smov 0  }
  0x10   :  { %s1333_s21 = smov 0   ;;  %s1335_s22 = smov 0  }
  0x11   :  { %s1337_s23 = smov 0   ;;  %s1339_s24 = smov 0  }
  0x12   :  { %s1341_s25 = smov 0   ;;  %s1343_s26 = smov 0  }
  0x13   :  { %s1345_s27 = smov 0   ;;  %s1347_s28 = smov 0  }
  0x14   :  { %s1349_s29 = smov 0   ;;  %s1351_s30 = smov 0  }
  0x15 LB: > { %1769 = sst [smem:[#allocation16_spill]] %s1248_s22  ;;  %s765_s5 = sadd.s32 4294967295, %s1280_s30   ;;  %s1280_s30 = sphi %s1351_s30, %s27_s30   ;;  %s1276_s29 = sphi %s1349_s29, %s1819_s29   ;;  %s1272_s28 = sphi %s1347_s28, %s1830_s28   ;;  %s1268_s27 = sphi %s1345_s27, %s1817_s27   ;;  %s1264_s26 = sphi %s1343_s26, %s1816_s26   ;;  %s1260_s25 = sphi %s1341_s25, %s1829_s25   ;;  %s1256_s24 = sphi %s1339_s24, %s1828_s24   ;;  %s1252_s23 = sphi %s1337_s23, %s1827_s23   ;;  %s1248_s22 = sphi %s1335_s22, %s1826_s22   ;;  %s1244_s21 = sphi %s1333_s21, %s1813_s21   ;;  %s1240_s20 = sphi %s1331_s20, %s1825_s20   ;;  %s1236_s19 = sphi %s1329_s19, %s1824_s19   ;;  %s1232_s18 = sphi %s1327_s18, %s1823_s18   ;;  %s1228_s17 = sphi %s1325_s17, %s1822_s17   ;;  %s1224_s16 = sphi %s1323_s16, %s1821_s16   ;;  %s1220_s15 = sphi %s1321_s15, %s1820_s15  }
  0x16   : > { %1770 = sst [smem:[#allocation17_spill]] %s1256_s24  ;;  %s39_s6 = sadd.s32 1, %s1268_s27 }
  0x17   : > { %1771 = sst [smem:[#allocation18_spill]] %s1260_s25  ;;  %p1401_p0 = scmp.ge.s32.totalorder %s39_s6, 2 }
  0x18   : > { %1772 = sst [smem:[#allocation19_spill]] %s1264_s26  ;;  %p62_p1 = scmp.ne.s32.totalorder %s1252_s23, %s1248_s22 }
  0x19   : > { %1773 = sst [smem:[#allocation20_spill]] %s1268_s27  ;;  %s1832_s6 = smov (%p1401_p0, %s39_s6), 0 }
  0x1a   : > { %1774 = sst [smem:[#allocation21_spill]] %s1276_s29  ;;  %p1756_p2 = scmp.eq.s32.totalorder %s1280_s30, 0 }
  0x1b   : > { %1776 = sst [smem:[#allocation22_spill]] %s1832_s6  ;;  %p68_p3 = scmp.ne.s32.totalorder %s1248_s22, %s1244_s21 }
  0x1c   : > { %s1417_s10 = ssub.s32 %s1268_s27, %s1832_s6  ;;  %p1419_p4 = scmp.eq.s32.totalorder %s765_s5, 0 }
  0x1d   : > { %p1425_p5 = por %p1756_p2, %p62_p1  ;;  %p1429_p6 = scmp.eq.s32.totalorder %s765_s5, 11 }
  0x1e   : > { %p1435_p7 = por %p1419_p4, %p68_p3  ;;  %p884_p8 = scmp.lt.s32.totalorder %s1280_s30, 12 }
  0x1f   : > { %s202_s21 = sand.u32 1, %s1252_s23   ;;  %s805_s8 = sshll.u32 %s1276_s29, 2 }
  0x20   : > { %s1780_s14 = scalar_select %p1435_p7, 1, 0 }
  0x21   : > { %s769_s9 = sshll.u32 %s202_s21, 4  ;;  %s212_s6 = sadd.s32 %s1268_s27, %s805_s8 }
  0x22   : > { %1781 = sst [smem:[#allocation23_spill]] %s1780_s14  ;;  %s206_s4 = scalar_lea.vmem [#allocation4], %s769_s9 }
  0x23   : > { %s215_s3 = sshll.u32 %s206_s4, 4  ;;  %s772_s26 = sshll.u32 %s212_s6, 7  ;;  %s216_s3 = int_to_ptr.vmem [resolvable:$true] %s215_s3 }
  0x24   : > { %s1782_s0 = sld [smem:[#allocation27_spill]]  ;;  %p1450_p9 = pnand %p884_p8, %p1425_p5 }
  0x25   : > { %s203_s14 = scalar_lea.sflag [#allocation5], %s202_s21  ;;  %s1043_s22 = scalar_lea.vmem %s216_s3, 256 }
  0x26   : > { %p1032_p10 = pneg %p1450_p9  ;;  %p1044_p11 = scmp.ne.s32.totalorder %s216_s3, %s1043_s22 }
  0x27   : > { %s1282_s4 = smov [#allocation4]  }
  0x28   : > { %p1046_p12 = pnand %p1044_p11, %p1032_p10  ;;  %s1048_s6 = sshll.u32 %s1282_s4, 4  ;;  %s1049_s6 = int_to_ptr.vmem [resolvable:$false] %s1048_s6 }
  0x29   : > { %s1050_s8 = scalar_lea.vmem %s1049_s6, 512  ;;  %p1051_p1 = scmp.lt.s32.totalorder %s216_s3, %s1049_s6 }
  0x2a   : > { %s214_s5 = scalar_lea.hbm %s1782_s0, %s772_s26  ;;  %p1047_p13 = pneg %p1046_p12 }
  0x2b   : > { %p1052_p3 = scmp.lt.s32.totalorder %s1050_s8, %s1043_s22 }
  0x2d   : > { %p1053_p2 = por %p1052_p3, %p1051_p1 }
  0x2f   : > { %p1054_p7 = pnand %p1053_p2, %p1047_p13 }
  0x31   : > { %1057 = shalt.err (!%p1054_p7)
}
  0x32   : > { %s1283_s2 = smov 256   ;;  %s1758_s22 = smov 128  }
  0x33   : > { %s1759_s24 = smov 8   ;;  %p777_p2 = scmp.ge.s32.totalorder %s1280_s30, 1 }
  0x34   : > { %873 = dma.hbm_to_vmem [thread:$0]  (!%p1450_p9), %s214_s5, 256, %s216_s3, %s203_s14, %s1283_s2, %s1758_s22, %s1759_s24  }
  0x35   : > { %p252_p5 = scmp.lt.s32.totalorder %s1280_s30, 13  ;;  %s766_s9 = sadd.s32 4294967294, %s1280_s30  }
  0x36   : > { %s42_s12 = sadd.s32 1, %s1272_s28  ;;  %s83_s21 = sadd.s32 1, %s1240_s20 }
  0x37   : > { %p1462_p7 = pnand %p777_p2, %p252_p5  ;;  %s1834_s12 = smov (!%p1401_p0, %s42_s12), %s1272_s28 }
  0x38   : > { %p90_p10 = scmp.ne.s32.totalorder %s1240_s20, %s1236_s19  ;;  %p96_p9 = scmp.ne.s32.totalorder %s1236_s19, %s1232_s18 }
  0x39   : > { %p44_p11 = scmp.ge.s32.totalorder %s1834_s12, 3  ;;  %s137_s3 = sadd.s32 1, %s1228_s17 }
  0x3a   : > { %p1785_p12 = scmp.eq.s32.totalorder %s1280_s30, 0  ;;  %p1485_p1 = por %p96_p9, %p1419_p4 }
  0x3b   : > { %s1836_s12 = smov (%p44_p11, %s1834_s12), 0  ;;  %s1789_s7 = sadd.s32 1, %s1276_s29 }
  0x3c   : > { %p1479_p13 = por %p90_p10, %p1785_p12  ;;  %1788 = sst [smem:[#allocation24_spill]] %s1836_s12 }
  0x3d   : > { %s1838_s7 = smov (!%p44_p11, %s1789_s7), %s1276_s29  ;;  %s79_s18 = ssub.s32 %s1272_s28, %s1836_s12 }
  0x3e   : > { %p147_p0 = scmp.ne.s32.totalorder %s1228_s17, %s1224_s16  ;;  %p48_p3 = scmp.ge.s32.totalorder %s1838_s7, 2 }
  0x3f   : > { %s80_s5 = sor.u32 %s79_s18, %s1417_s10  ;;  %p153_p5 = scmp.ne.s32.totalorder %s1224_s16, %s1220_s15 }
  0x40   : > { %p81_p2 = scmp.eq.s32.totalorder %s80_s5, 0  ;;  %p1501_p4 = por %p1429_p6, %p147_p0 }
  0x41   : > { %s1840_s7 = smov (%p48_p3, %s1838_s7), 0  ;;  %p154_p11 = scmp.eq.s32.totalorder %s766_s9, 11 }
  0x42   : > { %1791 = sst [smem:[#allocation25_spill]] %s1840_s7  ;;  %s50_s6 = ssub.s32 %s1276_s29, %s1840_s7 }
  0x43   : > { %s1508_s4 = scalar_select %p81_p2, %s1240_s20, %s83_s21  }
  0x44   : > { %s52_s8 = sor.u32 %s1417_s10, %s50_s6  ;;  %s134_s2 = sor.u32 %s79_s18, %s50_s6 }
  0x45   : > { %p53_p10 = scmp.eq.s32.totalorder %s52_s8, 0  ;;  %p135_p9 = scmp.eq.s32.totalorder %s134_s2, 0 }
  0x46   : > { %s225_s13 = sand.u32 1, %s1240_s20   ;;  %s1792_s5 = sadd.s32 1, %s1252_s23 }
  0x47   : > { %s1519_s22 = scalar_select %p53_p10, %s1252_s23, %s1792_s5  }
  0x48   : > { %s1522_s24 = scalar_select %p135_p9, %s1228_s17, %s137_s3  }
  0x49   : > { %1793 = sst [smem:[#allocation26_spill]] %s1519_s22  ;;  %p1524_p6 = por %p154_p11, %p153_p5 }
  0x4a   : > { %s773_s12 = sshll.u32 %s225_s13, 7  ;;  %s859_s21 = smul.u32 48, %s1268_s27 }
  0x4b   : > { %p1533_p12 = pnand %p884_p8, %p1479_p13  ;;  %s229_s18 = scalar_lea.vmem [#allocation7], %s773_s12 }
  0x4c   : > { %s235_s9 = sadd.s32 %s1272_s28, %s859_s21  ;;  %s238_s6 = sshll.u32 %s229_s18, 4  ;;  %s239_s6 = int_to_ptr.vmem [resolvable:$true] %s238_s6 }
  0x4d   : > { %s776_s8 = sshll.u32 %s235_s9, 7  ;;  %s1796_s1 = sld [smem:[#allocation28_spill]] }
  0x4e   : > { %s226_s7 = scalar_lea.sflag [#allocation8], %s225_s13  ;;  %p1060_p0 = pneg %p1533_p12 }
  0x4f   : > { %s1071_s29 = scalar_lea.vmem %s239_s6, 2048  ;;  %s1286_s25 = smov [#allocation7]  }
  0x50   : > { %p1072_p3 = scmp.ne.s32.totalorder %s239_s6, %s1071_s29  ;;  %s1076_s27 = sshll.u32 %s1286_s25, 4  ;;  %s1077_s27 = int_to_ptr.vmem [resolvable:$false] %s1076_s27 }
  0x51   : > { %s1078_s22 = scalar_lea.vmem %s1077_s27, 4096  ;;  %p1079_p13 = scmp.lt.s32.totalorder %s239_s6, %s1077_s27 }
  0x52   : > { %p1074_p2 = pnand %p1072_p3, %p1060_p0  ;;  %p1080_p5 = scmp.lt.s32.totalorder %s1078_s22, %s1071_s29 }
  0x53   : > { %s237_s5 = scalar_lea.hbm %s1796_s1, %s776_s8 }
  0x54   : > { %p1075_p8 = pneg %p1074_p2  ;;  %p1081_p10 = por %p1080_p5, %p1079_p13 }
  0x56   : > { %p1082_p9 = pnand %p1081_p10, %p1075_p8 }
  0x58   : > { %1085 = shalt.err (!%p1082_p9)
}
  0x59   : > { %s1287_s12 = smov 384   ;;  %s1797_s21 = smov 8  }
  0x5a   : > { %s1798_s13 = smov 128   ;;  %256 = sbr.rel (%p1462_p7) target bundleno = 579 (0x243), region = 32 }
  0x5b   : > { %876 = dma.hbm_to_vmem [thread:$0]  (!%p1533_p12), %s237_s5, 2048, %s239_s6, %s226_s7, %s1287_s12, %s1798_s13, %s1797_s21  }
  0x5c   : > { %s1799_s9 = sld [smem:[#allocation16_spill]] (!%p1462_p7) }
  0x5d   : > { %s1800_s18 = sld [smem:[#allocation23_spill]] (!%p1462_p7) }
  0x62   : > { %s258_s8 = sand.u32 1, %s1799_s9  }
  0x63   : > { %s1550_s3 = sshll.u32 %s258_s8, 4  ;;  %s259_s27 = scalar_lea.sflag [#allocation5], %s258_s8 }
  0x64   : > { %s262_s29 = scalar_lea.vmem [#allocation4], %s1550_s3  ;;  %p1801_p11 = scmp.ne.s32.totalorder %s1800_s18, 0 }
  0x66   : > { %1203 = dma.done.wait (%p1801_p11), %s259_s27, 256  }
  0x67   : > { %1205 = vsyncadd (%p1801_p11), %s259_s27, 4294967040  ;;  %s267_s22 = sand.u32 1, %s1236_s19  }
  0x68   : > { %s779_s7 = sshll.u32 %s267_s22, 7  ;;  %s268_s10 = scalar_lea.sflag [#allocation8], %s267_s22 }
  0x69   : > { %s1558_s26 = scalar_lea.vmem [#allocation7], %s779_s7 }
  0x6a   : > { %1207 = dma.done.wait (%p1485_p1), %s268_s10, 2048  }
  0x6b   : > { %1209 = vsyncadd (%p1485_p1), %s268_s10, 4294965248  ;;  %s1802_s6 = sld [smem:[#allocation18_spill]]  ;;  %s1565_s2 = sand.u32 1, %s1224_s16  }
  0x6c   : > { %s780_s5 = sshll.u32 %s1565_s2, 4  ;;  %s1803_s21 = sld [smem:[#allocation29_spill]] }
  0x6d   : > { %s1576_s9 = scalar_lea.vmem [#allocation9], %s780_s5  ;;  %s1578_s18 = scalar_lea.vmem [#allocation10], %s780_s5 }
  0x6e   : > { %s1804_s14 = sld [smem:[#allocation17_spill]] }
  0x71   : > { %p311_p7 = scmp.lt.s32.totalorder %s1802_s6, 2 }
  0x73   : > { %s1842_s6 = smov (!%p311_p7, %s1802_s6), 2 }
  0x74   : > { %s313_s13 = scalar_lea.vmem %s1803_s21, %s1842_s6  ;;  %p782_p1 = scmp.ne.s32.totalorder %s1804_s14, 0 }
  0x76   : > { %319 = sbr.rel (%p782_p1) target bundleno = 126 (0x7e), region = 44 }
  0x7b   : > { %vm322_vm0 = vcmask 7168   ;;  %v1288_v0 = vmov 0.0  }
  0x7c   : > { %320 = vst [vmem:[#allocation2] sm:$0xff] %v1288_v0  ;;  %321 = vst [vmem:[#allocation2 + $0x8] sm:$0xff] %v1288_v0 }
  0x7d   : > { %323 = vst.msk [vmem:[#allocation3] sm:$0xff] %vm322_vm0, %v1288_v0  ;;  %324 = vst.msk [vmem:[#allocation3 + $0x8] sm:$0xff] %vm322_vm0, %v1288_v0 }
  0x7e PF: > { %v344_v1 = vld [vmem:[%s1558_s26 + $0x78] sm:$0xff]  ;;  %v343_v2 = vld [vmem:[%s1558_s26 + $0x70] sm:$0xff]  ;;  %v342_v3 = vld [vmem:[%s1558_s26 + $0x68] sm:$0xff]  ;;  %vm434_vm1 = vcmask 7168   ;;  %s1805_s8 = sld [smem:[#allocation17_spill]] }
  0x7f   : > { %824 = vmatprep.subr.mxu0 %v344_v1  ;;  %v341_v4 = vld [vmem:[%s1558_s26 + $0x60] sm:$0xff]  ;;  %v340_v6 = vld [vmem:[%s1558_s26 + $0x58] sm:$0xff]  ;;  %v339_v9 = vld [vmem:[%s1558_s26 + $0x50] sm:$0xff] }
  0x80   : > { %825 = vmatpush3.msra.mxu0 %v344_v1  ;;  %v325_v5 = vld [vmem:[%s262_s29] sm:$0xff]  ;;  %v326_v8 = vld [vmem:[%s262_s29 + $0x8] sm:$0xff] }
  0x81   : > { %826 = vmatprep.subr.mxu0 %v343_v2  ;;  %856 = vmatprep.mubr.f32.mxu0 %v325_v5  ;;  %v426_v7 = vmul.f32 %v325_v5, %v325_v5  ;;  %v427_v10 = vmul.f32 %v326_v8, %v326_v8  ;;  %v338_v11 = vld [vmem:[%s1558_s26 + $0x48] sm:$0xff]  ;;  %v337_v12 = vld [vmem:[%s1558_s26 + $0x40] sm:$0xff]  ;;  %v336_v13 = vld [vmem:[%s1558_s26 + $0x38] sm:$0xff] }
  0x82   : > { %827 = vmatpush3.msra.mxu0 %v343_v2  ;;  %v335_v14 = vld [vmem:[%s1558_s26 + $0x30] sm:$0xff]  ;;  %v334_v15 = vld [vmem:[%s1558_s26 + $0x28] sm:$0xff]  ;;  %v333_v16 = vld [vmem:[%s1558_s26 + $0x20] sm:$0xff] }
  0x83   : > { %828 = vmatprep.subr.mxu0 %v342_v3  ;;  %428 = vadd.xlane.f32.xlu0 %v426_v7  ;;  %v332_v17 = vld [vmem:[%s1558_s26 + $0x18] sm:$0xff]  ;;  %v331_v18 = vld [vmem:[%s1558_s26 + $0x10] sm:$0xff]  ;;  %v330_v19 = vld [vmem:[%s1558_s26 + $0x8] sm:$0xff] }
  0x84   : > { %829 = vmatpush3.msra.mxu0 %v342_v3  ;;  %v329_v20 = vld [vmem:[%s1558_s26] sm:$0xff]  ;;  %v424_v21 = vld [vmem:[#allocation3] sm:$0xff]  ;;  %v425_v24 = vld [vmem:[#allocation3 + $0x8] sm:$0xff]  ;;  %p783_p12 = scmp.ne.s32.totalorder %s1805_s8, 1 }
  0x85   : > { %830 = vmatprep.subr.mxu0 %v341_v4  ;;  %v328_v27 = vld [vmem:[#allocation2 + $0x8] sm:$0xff]  ;;  %v327_v29 = vld [vmem:[#allocation2] sm:$0xff] }
  0x86   : > { %831 = vmatpush3.msra.mxu0 %v341_v4 }
  0x87   : > { %832 = vmatprep.subr.mxu0 %v340_v6  ;;  %430 = vadd.xlane.f32.xlu0 %v427_v10 }
  0x88   : > { %833 = vmatpush3.msra.mxu0 %v340_v6 }
  0x89   : > { %834 = vmatprep.subr.mxu0 %v339_v9 }
  0x8a   : > { %835 = vmatpush3.msra.mxu0 %v339_v9 }
  0x8b   : > { %836 = vmatprep.subr.mxu0 %v338_v11 }
  0x8c   : > { %837 = vmatpush3.msra.mxu0 %v338_v11 }
  0x8d   : > { %838 = vmatprep.subr.mxu0 %v337_v12 }
  0x8e   : > { %839 = vmatpush3.msra.mxu0 %v337_v12 }
  0x8f   : > { %840 = vmatprep.subr.mxu0 %v336_v13 }
  0x90   : > { %841 = vmatpush3.msra.mxu0 %v336_v13 }
  0x91   : > { %842 = vmatprep.subr.mxu0 %v335_v14 }
  0x92   : > { %843 = vmatpush3.msra.mxu0 %v335_v14 }
  0x93   : > { %844 = vmatprep.subr.mxu0 %v334_v15 }
  0x94   : > { %845 = vmatpush3.msra.mxu0 %v334_v15 }
  0x95   : > { %846 = vmatprep.subr.mxu0 %v333_v16 }
  0x96   : > { %847 = vmatpush3.msra.mxu0 %v333_v16 }
  0x97   : > { %848 = vmatprep.subr.mxu0 %v332_v17 }
  0x98   : > { %849 = vmatpush3.msra.mxu0 %v332_v17 }
  0x99   : > { %850 = vmatprep.subr.mxu0 %v331_v18 }
  0x9a   : > { %851 = vmatpush3.msra.mxu0 %v331_v18 }
  0x9b   : > { %852 = vmatprep.subr.mxu0 %v330_v19 }
  0x9c   : > { %853 = vmatpush3.msra.mxu0 %v330_v19 }
  0x9d   : > { %854 = vmatprep.subr.mxu0 %v329_v20 }
  0x9e   : > { %855 = vmatpush3.msra.mxu0 %v329_v20 }
  0x9f   : > { %857 = vmatmul.mubr.f32.vlgmr.msra.gmra.mxu0 %v326_v8 }
 0x10c   : > { %v429_v22 = vpop.xlane.xlu0 %428 }
 0x10d   : > { %v432_v23 = vadd.f32 %v429_v22, %v424_v21 }
 0x10f   : > { %435 = vst.msk [vmem:[#allocation3] sm:$0xff] %vm434_vm1, %v432_v23 }
 0x110   : > { %v431_v25 = vpop.xlane.xlu0 %430 }
 0x111   : > { %v433_v26 = vadd.f32 %v431_v25, %v425_v24 }
 0x113   : > { %436 = vst.msk [vmem:[#allocation3 + $0x8] sm:$0xff] %vm434_vm1, %v433_v26 }
 0x15f   : > { %v858_v28 = vpop.f32.mrf.mxu0 }
 0x160   : > { %v421_v30 = vadd.f32 %v858_v28, %v328_v27  ;;  %440 = sbr.rel (%p783_p12) target bundleno = 529 (0x211), region = 48 }
 0x161   : > { %v411_v31 = vpop.f32.mrf.mxu0 }
 0x162   : > { %423 = vst [vmem:[#allocation2 + $0x8] sm:$0xff] %v421_v30  ;;  %v420_v32 = vadd.f32 %v411_v31, %v327_v29 }
 0x164   : > { %422 = vst [vmem:[#allocation2] sm:$0xff] %v420_v32 }
 0x165   : > { %v441_v33 = vld [vmem:[#allocation3] sm:$0xff]  ;;  %v442_v34 = vld [vmem:[#allocation3 + $0x8] sm:$0xff]  ;;  %v1289_v35 = vmov 0   ;;  %v784_v43 = vld [vmem:[%s313_s13] ss:$0 sm:$0xff]  ;;  %v1290_v53 = vmov 0.0  }
 0x166   : > { %1024 = vset.pattern.permute.xlu0 %v1289_v35  ;;  %v443_v36 = vmax.f32 %v441_v33, 1e-16  ;;  %1025 = vset.pattern.permute.xlu1 %v1289_v35  ;;  %v444_v37 = vmax.f32 %v442_v34, 1e-16 }
 0x168   : > { %1026 = vrsqrt.f32 %v443_v36 }
 0x169   : > { %1028 = vrsqrt.f32 %v444_v37  ;;  %v450_v45 = vld [vmem:[#allocation2 + $0x8] sm:$0xff] }
 0x16a   : > { %v459_v48 = vmul.f32 %v784_v43, %v450_v45 }
 0x16b   : > { %v449_v42 = vld [vmem:[#allocation2] sm:$0xff] }
 0x16c   : > { %v458_v44 = vmul.f32 %v784_v43, %v449_v42 }
 0x175   : > { %v1027_v38 = vpop.eup %1026 }
 0x176   : > { %462 = vperm.xlu0 %1024, %v1027_v38   ;;  %v447_v39 = vmul.f32 %v1027_v38, %v441_v33  ;;  %v1029_v40 = vpop.eup %1028 }
 0x177   : > { %v448_v41 = vmul.f32 %v1029_v40, %v442_v34 }
 0x178   : > { %548 = vperm.xlu1 %1025, %v447_v39  }
 0x17a   : > { %467 = vperm.xlu0 %1024, %v1029_v40  }
 0x17c   : > { %553 = vperm.xlu1 %1025, %v448_v41  }
 0x1f1   : > { %v463_v46 = vpop.permute.xlu0 %462 }
 0x1f2   : > { %v470_v47 = vmul.f32 %v463_v46, %v458_v44 }
 0x1f3   : > { %v549_v52 = vpop.permute.xlu1 %548 }
 0x1f4   : > { %v785_v49 = vclamps-f32 %v470_v47, 1.0 }
 0x1f5   : > { %v468_v50 = vpop.permute.xlu0 %467 }
 0x1f6   : > { %v471_v51 = vmul.f32 %v468_v50, %v459_v48  ;;  %vm476_vm2 = vcmp.le.f32.partialorder %v785_v49, 0.7073883  ;;  %vm488_vm3 = vcmp.le.f32.partialorder %v785_v49, 0.0007963267  ;;  %vm502_vm4 = vcmp.le.f32.partialorder %v785_v49, -0.70626163 }
 0x1f7   : > { %v787_v54 = vsel %vm476_vm2, 1.0, %v1290_v53  ;;  %v789_v55 = vsel %vm488_vm3, 1.0, %v1290_v53  ;;  %v791_v56 = vsel %vm502_vm4, 1.0, %v1290_v53  ;;  %vm516_vm5 = vcmp.le.f32.partialorder %v785_v49, -0.99999875  ;;  %v554_v17 = vpop.permute.xlu1 %553 }
 0x1f8   : > { %v786_v57 = vclamps-f32 %v471_v51, 1.0  ;;  %v484_v58 = vmul.f32 2.0, %v787_v54  ;;  %v494_v59 = vadd.f32 %v789_v55, %v787_v54  ;;  %v496_v60 = vmul.f32 2.0, %v789_v55 }
 0x1f9   : > { %v510_v61 = vmul.f32 2.0, %v791_v56  ;;  %v793_v62 = vsel %vm516_vm5, 1.0, %v1290_v53  ;;  %v530_v63 = vmul.f32 %v785_v49, %v785_v49  ;;  %v556_v0 = vmul.f32 %v785_v49, %v549_v52 }
 0x1fa   : > { %v486_v1 = vsub.f32 1.0, %v484_v58  ;;  %v498_v2 = vsub.f32 1.0, %v496_v60  ;;  %v508_v3 = vadd.f32 %v791_v56, %v494_v59  ;;  %v524_v4 = vmul.f32 2.0, %v793_v62 }
 0x1fb   : > { %v532_v5 = vmul.f32 8.0, %v530_v63  ;;  %558 = vst [vmem:[%s1576_s9] sm:$0xff] %v556_v0  ;;  %vm477_vm6 = vcmp.le.f32.partialorder %v786_v57, 0.7073883  ;;  %vm489_vm7 = vcmp.le.f32.partialorder %v786_v57, 0.0007963267  ;;  %v512_v7 = vsub.f32 1.0, %v510_v61 }
 0x1fc   : > { %v500_v6 = vmul.f32 %v498_v2, %v486_v1  ;;  %v522_v8 = vadd.f32 %v793_v62, %v508_v3  ;;  %v788_v9 = vsel %vm477_vm6, 1.0, %v1290_v53  ;;  %v790_v12 = vsel %vm489_vm7, 1.0, %v1290_v53 }
 0x1fd   : > { %v534_v10 = vmul.f32 %v532_v5, %v530_v63  ;;  %v485_v11 = vmul.f32 2.0, %v788_v9  ;;  %vm503_vm8 = vcmp.le.f32.partialorder %v786_v57, -0.70626163  ;;  %v526_v14 = vsub.f32 1.0, %v524_v4 }
 0x1fe   : > { %v514_v13 = vmul.f32 %v512_v7, %v500_v6  ;;  %v495_v15 = vadd.f32 %v790_v12, %v788_v9  ;;  %v497_v16 = vmul.f32 2.0, %v790_v12  ;;  %v792_v20 = vsel %vm503_vm8, 1.0, %v1290_v53 }
 0x1ff   : > { %v536_v18 = vsub.f32 %v534_v10, %v532_v5  ;;  %v487_v19 = vsub.f32 1.0, %v485_v11  ;;  %vm517_vm9 = vcmp.le.f32.partialorder %v786_v57, -0.99999875  ;;  %v511_v23 = vmul.f32 2.0, %v792_v20 }
 0x200   : > { %v528_v21 = vmul.f32 %v526_v14, %v514_v13  ;;  %v499_v22 = vsub.f32 1.0, %v497_v16  ;;  %v794_v25 = vsel %vm517_vm9, 1.0, %v1290_v53  ;;  %v531_v26 = vmul.f32 %v786_v57, %v786_v57 }
 0x201   : > { %v538_v24 = vadd.f32 1.0, %v536_v18  ;;  %v557_v27 = vmul.f32 %v786_v57, %v554_v17  ;;  %v513_v29 = vsub.f32 1.0, %v511_v23  ;;  %v525_v30 = vmul.f32 2.0, %v794_v25 }
 0x202   : > { %v501_v28 = vmul.f32 %v499_v22, %v487_v19  ;;  %v542_v32 = vmul.f32 2.0, %v522_v8  ;;  %v509_v33 = vadd.f32 %v792_v20, %v495_v15  ;;  %v533_v34 = vmul.f32 8.0, %v531_v26 }
 0x203   : > { %v540_v31 = vmul.f32 %v538_v24, %v528_v21  ;;  %559 = vst [vmem:[%s1576_s9 + $0x8] sm:$0xff] %v557_v27  ;;  %v527_v37 = vsub.f32 1.0, %v525_v30 }
 0x204   : > { %v515_v35 = vmul.f32 %v513_v29, %v501_v28  ;;  %v535_v38 = vmul.f32 %v533_v34, %v531_v26  ;;  %v523_v40 = vadd.f32 %v794_v25, %v509_v33 }
 0x205   : > { %v544_v36 = vsub.f32 %v540_v31, %v542_v32 }
 0x206   : > { %v529_v41 = vmul.f32 %v527_v37, %v515_v35  ;;  %v537_v42 = vsub.f32 %v535_v38, %v533_v34  ;;  %v543_v45 = vmul.f32 2.0, %v523_v40 }
 0x207   : > { %v560_v39 = vmul.f32 %v549_v52, %v544_v36 }
 0x208   : > { %v539_v43 = vadd.f32 1.0, %v537_v42 }
 0x209   : > { %562 = vst [vmem:[%s1578_s18] sm:$0xff] %v560_v39 }
 0x20a   : > { %v541_v44 = vmul.f32 %v539_v43, %v529_v41 }
 0x20c   : > { %v545_v46 = vsub.f32 %v541_v44, %v543_v45 }
 0x20e   : > { %v561_v47 = vmul.f32 %v554_v17, %v545_v46 }
 0x210   : > { %563 = vst [vmem:[%s1578_s18 + $0x8] sm:$0xff] %v561_v47 }
 0x211 PF: > { %s1807_s22 = sld [smem:[#allocation19_spill]]  ;;  %s585_s26 = sshll.u32 %s1576_s9, 4  ;;  %s1616_s26 = int_to_ptr.vmem [resolvable:$true] %s585_s26 }
 0x212   : > { %s1808_s7 = sld [smem:[#allocation18_spill]]  ;;  %s565_s8 = scalar_lea.sflag [#allocation6], %s1565_s2 }
 0x213   : > { %s1809_s21 = sld [smem:[#allocation30_spill]]  ;;  %s1086_s3 = scalar_lea.vmem %s1616_s26, 256 }
 0x214   : > { %p1087_p0 = scmp.ne.s32.totalorder %s1616_s26, %s1086_s3  ;;  %s1291_s9 = smov [#allocation9]  }
 0x215   : > { %s1090_s27 = sshll.u32 %s1291_s9, 4  ;;  %s1091_s27 = int_to_ptr.vmem [resolvable:$false] %s1090_s27 }
 0x216   : > { %p1088_p3 = pnand %p1087_p0, %p1501_p4  ;;  %s1092_s29 = scalar_lea.vmem %s1091_s27, 512 }
 0x217   : > { %s860_s10 = smul.u32 6, %s1807_s22  ;;  %p1093_p8 = scmp.lt.s32.totalorder %s1616_s26, %s1091_s27 }
 0x218   : > { %p1089_p2 = pneg %p1088_p3  ;;  %p1094_p13 = scmp.lt.s32.totalorder %s1092_s29, %s1086_s3 }
 0x219   : > { %s1614_s6 = sadd.s32 %s1808_s7, %s860_s10  ;;  %s1810_s13 = smov %s1809_s21 }
 0x21a   : > { %s799_s5 = sshll.u32 %s1614_s6, 7  ;;  %p1095_p5 = por %p1094_p13, %p1093_p8 }
 0x21b   : > { %s1624_s14 = scalar_lea.hbm %s1809_s21, %s799_s5 }
 0x21c   : > { %p1096_p10 = pnand %p1095_p5, %p1089_p2 }
 0x21e   : > { %1099 = shalt.err (!%p1096_p10)
}
 0x21f   : > { %s1100_s22 = scalar_lea.hbm %s1624_s14, 256  ;;  %s1104_s25 = scalar_lea.hbm %s1810_s13, 1536 }
 0x220   : > { %p1101_p9 = scmp.ne.s32.totalorder %s1624_s14, %s1100_s22  ;;  %p1105_p1 = scmp.lt.s32.totalorder %s1624_s14, %s1810_s13 }
 0x221   : > { %p1106_p12 = scmp.lt.s32.totalorder %s1104_s25, %s1100_s22 }
 0x222   : > { %p1102_p11 = pnand %p1101_p9, %p1501_p4 }
 0x223   : > { %p1107_p0 = por %p1106_p12, %p1105_p1 }
 0x224   : > { %p1103_p7 = pneg %p1102_p11 }
 0x226   : > { %p1108_p3 = pnand %p1107_p0, %p1103_p7 }
 0x228   : > { %1111 = shalt.err (!%p1108_p3)
}
 0x229   : > { %s1292_s3 = smov 128   ;;  %s1293_s9 = smov 384  }
 0x22a   : > { %s1294_s27 = smov 8   ;;  %s1811_s7 = sld [smem:[#allocation31_spill]] }
 0x22b   : > { %866 = dma.vmem_to_hbm [thread:$0]  (%p1501_p4), %s1616_s26, 256, %s1624_s14, %s565_s8, %s1292_s3, %s1293_s9, %s1294_s27  }
 0x22c   : > { %s603_s25 = sshll.u32 %s1578_s18, 4  ;;  %s570_s12 = scalar_lea.sflag [#allocation11], %s1565_s2  ;;  %s1660_s25 = int_to_ptr.vmem [resolvable:$true] %s603_s25 }
 0x22d   : > { %s1112_s21 = scalar_lea.vmem %s1660_s25, 256  ;;  %s1295_s1 = smov [#allocation10]  }
 0x22e   : > { %p1113_p2 = scmp.ne.s32.totalorder %s1660_s25, %s1112_s21  ;;  %s1116_s26 = sshll.u32 %s1295_s1, 4  ;;  %s1117_s26 = int_to_ptr.vmem [resolvable:$false] %s1116_s26 }
 0x22f   : > { %s1118_s6 = scalar_lea.vmem %s1117_s26, 512  ;;  %p1119_p5 = scmp.lt.s32.totalorder %s1660_s25, %s1117_s26 }
 0x230   : > { %s1657_s10 = scalar_lea.hbm %s1811_s7, %s799_s5  ;;  %p1114_p8 = pnand %p1113_p2, %p1501_p4 }
 0x231   : > { %p1120_p10 = scmp.lt.s32.totalorder %s1118_s6, %s1112_s21 }
 0x232   : > { %p1115_p13 = pneg %p1114_p8 }
 0x233   : > { %p1121_p9 = por %p1120_p10, %p1119_p5 }
 0x235   : > { %p1122_p11 = pnand %p1121_p9, %p1115_p13 }
 0x237   : > { %1125 = shalt.err (!%p1122_p11)
}
 0x238   : > { %s1126_s18 = scalar_lea.hbm %s1657_s10, 256  ;;  %s1130_s1 = scalar_lea.hbm %s1811_s7, 1536 }
 0x239   : > { %p1127_p7 = scmp.ne.s32.totalorder %s1657_s10, %s1126_s18  ;;  %p1131_p0 = scmp.lt.s32.totalorder %s1657_s10, %s1811_s7 }
 0x23a   : > { %p1132_p3 = scmp.lt.s32.totalorder %s1130_s1, %s1126_s18 }
 0x23b   : > { %p1128_p1 = pnand %p1127_p7, %p1501_p4 }
 0x23c   : > { %p1133_p2 = por %p1132_p3, %p1131_p0 }
 0x23d   : > { %p1129_p12 = pneg %p1128_p1 }
 0x23f   : > { %p1134_p8 = pnand %p1133_p2, %p1129_p12 }
 0x241   : > { %1137 = shalt.err (!%p1134_p8)
}
 0x242   : > { %867 = dma.vmem_to_hbm [thread:$0]  (%p1501_p4), %s1660_s25, 256, %s1657_s10, %s570_s12, %s1292_s3, %s1293_s9, %s1294_s27  }
 0x243 PF: > { %p885_p13 = scmp.ge.s32.totalorder %s1280_s30, 2  ;;  %s618_s29 = sand.u32 1, %s1220_s15  }
 0x244   : > { %s619_s22 = scalar_lea.sflag [#allocation6], %s618_s29 }
 0x245   : > { %p878_p5 = pnand %p885_p13, %p1524_p6 }
 0x247   : > { %p879_p10 = pneg %p878_p5 }
 0x249   : > { %1211 = dma.done.wait (%p879_p10), %s619_s22, 256  }
 0x24a   : > { %1213 = vsyncadd (%p879_p10), %s619_s22, 4294967040  ;;  %s628_s21 = scalar_lea.sflag [#allocation11], %s618_s29 }
 0x24b   : > { %1215 = dma.done.wait (%p879_p10), %s628_s21, 256  }
 0x24c   : > { %1217 = vsyncadd (%p879_p10), %s628_s21, 4294967040  ;;  %s27_s30 = sadd.s32 1, %s1280_s30   ;;  %s1813_s21 = sld [smem:[#allocation16_spill]] }
 0x24d   : > { %p1691_p9 = scmp.ge.s32.totalorder %s27_s30, 14   ;;  %s1814_s0 = sld [smem:[#allocation26_spill]] }
 0x24e   : > { %s1815_s3 = sld [smem:[#allocation20_spill]]  ;;  %s1820_s15 = smov %s1224_s16 }
 0x24f   : > { %s1816_s26 = sld [smem:[#allocation21_spill]]  ;;  %s1821_s16 = smov %s1228_s17 }
 0x250   : > { %s1817_s27 = sld [smem:[#allocation22_spill]]  ;;  %s1822_s17 = smov %s1522_s24 }
 0x251   : > { %s1818_s9 = sld [smem:[#allocation24_spill]]  ;;  %s1823_s18 = smov %s1236_s19 }
 0x252   : > { %s1819_s29 = sld [smem:[#allocation25_spill]]  ;;  %s1824_s19 = smov %s1240_s20 }
 0x253   : > { %s1825_s20 = smov %s1508_s4  ;;  %s1826_s22 = smov %s1252_s23 }
 0x254   : > { %s1827_s23 = smov %s1814_s0  ;;  %s1828_s24 = smov %s1815_s3 }
 0x255   : > { %s1829_s25 = smov %s1272_s28  ;;  %26 = sbr.rel (!%p1691_p9) target bundleno = 21 (0x15), region = 118 }
 0x257   : > { %s1830_s28 = smov %s1818_s9 }
 0x25a   :  { %633 = vsyncpa [#allocation5], 1 }
 0x25b   :  { %635 = vsyncpa [#allocation5 + $0x1], 1 }
 0x25c   :  { %636 = vsyncpa [#allocation8], 1 }
 0x25d   :  { %638 = vsyncpa [#allocation8 + $0x1], 1 }
 0x25e   :  { %639 = vsyncpa [#allocation6], 1 }
 0x25f   :  { %641 = vsyncpa [#allocation6 + $0x1], 1 }
 0x260   :  { %642 = vsyncpa [#allocation11], 1 }
 0x261   :  { %644 = vsyncpa [#allocation11 + $0x1], 1 }

</bundles_post_ra>
